<compile_context>
chip_gen: v6e
topology: v6e:2x2x1
jax: 0.10.0
libtpu: 0.0.40
codegen_flags: <defaults>
</compile_context>

<pallas_src>
import math

import jax
import jax.numpy as jnp
from jax.experimental import pallas as pl
from jax.experimental.pallas import tpu as pltpu

HIDDEN = 256       # 'sloy' in the PyTorch module
HEAD_PAD = 128     # fused (inventory + price) head padded to a full lane width
MAX_TILE_B = 1024  # batch tile; sized for v7x's smaller VMEM, fine on v5e/v6e


# ----------------------------------------------------------------------------- kernel
def _actor_kernel(x_ref, w1_ref, w2h_ref, bias_ref, out_ref):
    """One batch tile:  relu(relu(x@W1+b1)@W2+b2) @ [Wi|Wp]_pad + [bi|bp]_pad."""
    x = x_ref[...]                                        # (TILE_B, in_dim)  bf16
    w1 = w1_ref[...]                                      # (in_dim, 256)     bf16
    w2 = w2h_ref[:, :HIDDEN]                              # (256, 256)        bf16
    wh = w2h_ref[:, HIDDEN:HIDDEN + HEAD_PAD]             # (256, 128)        bf16
    b1 = bias_ref[:, :HIDDEN]                             # (1, 256)          f32
    b2 = bias_ref[:, HIDDEN:2 * HIDDEN]                   # (1, 256)          f32
    bh = bias_ref[:, 2 * HIDDEN:2 * HIDDEN + HEAD_PAD]    # (1, 128)          f32

    # Trunk: Linear -> ReLU -> Linear -> ReLU (MXU bf16 matmuls, f32 accumulate)
    h1 = jnp.dot(x, w1, preferred_element_type=jnp.float32) + b1
    h1 = jnp.maximum(h1, 0.0).astype(x.dtype)
    h2 = jnp.dot(h1, w2, preferred_element_type=jnp.float32) + b2
    h2 = jnp.maximum(h2, 0.0).astype(x.dtype)

    # Fused heads: one 128-lane output (raw logits, padded lanes are zero-weight)
    out_ref[...] = (jnp.dot(h2, wh, preferred_element_type=jnp.float32)
                    + bh).astype(out_ref.dtype)


# ----------------------------------------------------------------------------- wrapper
def ppo_d_actor_forward(x, packed_params, inv_size, prc_size):
    """Full forward pass.  Returns (raw_inv, raw_prc) just like the nn.Module."""
    w1, w2h, bias = packed_params
    batch, input_dim = x.shape

    # Pad batch to a sublane multiple (8) and pick the batch tile.
    batch_pad = max(8, -(-batch // 8) * 8)
    if batch_pad > MAX_TILE_B:
        tile_b = MAX_TILE_B
        batch_pad = -(-batch_pad // tile_b) * tile_b
    else:
        tile_b = batch_pad
    if batch_pad != batch:
        x = jnp.pad(x, ((0, batch_pad - batch), (0, 0)))
    x = x.astype(jnp.bfloat16)

    grid = (batch_pad // tile_b,)

    flops = 2 * batch_pad * (input_dim * HIDDEN + HIDDEN * HIDDEN + HIDDEN * HEAD_PAD)
    bytes_accessed = (batch_pad * input_dim * 2        # x (bf16)
                      + w1.size * 2 + w2h.size * 2     # weights (bf16)
                      + bias.size * 4                  # biases (f32)
                      + batch_pad * HEAD_PAD * 4)      # fused output (f32)

    out = pl.pallas_call(
        _actor_kernel,
        out_shape=jax.ShapeDtypeStruct((batch_pad, HEAD_PAD), jnp.float32),
        grid_spec=pltpu.PrefetchScalarGridSpec(
            num_scalar_prefetch=0,
            grid=grid,
            in_specs=[
                pl.BlockSpec((tile_b, input_dim), lambda i: (i, 0)),   # x tiles
                pl.BlockSpec(w1.shape, lambda i: (0, 0)),              # resident
                pl.BlockSpec(w2h.shape, lambda i: (0, 0)),             # resident
                pl.BlockSpec(bias.shape, lambda i: (0, 0)),            # resident
            ],
            out_specs=pl.BlockSpec((tile_b, HEAD_PAD), lambda i: (i, 0)),
        ),
        compiler_params=pltpu.CompilerParams(
            dimension_semantics=("parallel",)),
        cost_estimate=pl.CostEstimate(flops=int(flops), transcendentals=0,
                                      bytes_accessed=int(bytes_accessed)),
    )(x, w1, w2h, bias)

    raw_inv = out[:batch, :inv_size]
    raw_prc = out[:batch, inv_size:inv_size + prc_size]
    return raw_inv, raw_prc


# ----------------------------------------------------------------------------- params
def init_params(key, input_dim, inv_size, prc_size):
    """Deterministic init mimicking torch.nn.Linear (uniform +-1/sqrt(fan_in)).

    Weights are returned already transposed to (in_features, out_features)."""
    def linear(key, fan_in, fan_out):
        kw, kb = jax.random.split(key)
        bound = 1.0 / math.sqrt(fan_in)
        w = jax.random.uniform(kw, (fan_in, fan_out), jnp.float32, -bound, bound)
        b = jax.random.uniform(kb, (1, fan_out), jnp.float32, -bound, bound)
        return w, b

    k1, k2, k3, k4 = jax.random.split(key, 4)
    w1, b1 = linear(k1, input_dim, HIDDEN)
    w2, b2 = linear(k2, HIDDEN, HIDDEN)
    wi, bi = linear(k3, HIDDEN, inv_size)
    wp, bp = linear(k4, HIDDEN, prc_size)
    return (w1, b1, w2, b2, wi, bi, wp, bp)


def pack_params(raw_params, inv_size, prc_size):
    """Pack the 8 torch-style tensors into 3 kernel buffers (fused heads, bf16)."""
    assert inv_size + prc_size <= HEAD_PAD, "fused head must fit in 128 lanes"
    w1, b1, w2, b2, wi, bi, wp, bp = raw_params

    wh = jnp.zeros((HIDDEN, HEAD_PAD), jnp.float32)
    wh = wh.at[:, :inv_size].set(wi).at[:, inv_size:inv_size + prc_size].set(wp)
    bh = jnp.zeros((1, HEAD_PAD), jnp.float32)
    bh = bh.at[:, :inv_size].set(bi).at[:, inv_size:inv_size + prc_size].set(bp)

    w1_p = w1.astype(jnp.bfloat16)                                   # (in, 256)
    w2h = jnp.concatenate([w2, wh], axis=1).astype(jnp.bfloat16)     # (256, 384)
    bias = jnp.concatenate([b1, b2, bh], axis=1).astype(jnp.float32) # (1, 640)
    return (w1_p, w2h, bias)


# ----------------------------------------------------------------------------- reference
def _reference_forward(x, raw_params):
    """Pure-JAX reference with the same bf16 weight/activation quantization."""
    w1, b1, w2, b2, wi, bi, wp, bp = raw_params
    xb = x.astype(jnp.bfloat16)
    h = jnp.dot(xb, w1.astype(jnp.bfloat16), preferred_element_type=jnp.float32) + b1
    h = jnp.maximum(h, 0.0).astype(jnp.bfloat16)
    h = jnp.dot(h, w2.astype(jnp.bfloat16), preferred_element_type=jnp.float32) + b2
    h = jnp.maximum(h, 0.0).astype(jnp.bfloat16)
    inv = jnp.dot(h, wi.astype(jnp.bfloat16), preferred_element_type=jnp.float32) + bi
    prc = jnp.dot(h, wp.astype(jnp.bfloat16), preferred_element_type=jnp.float32) + bp
    return inv, prc


if __name__ == "__main__":
    # Small, module-consistent shapes: batch=8 observations of dim 32,
    # 5 discrete inventory actions, 7 discrete price actions.
    batch, input_dim, inv_size, prc_size = 8, 32, 5, 7

    key = jax.random.PRNGKey(0)
    k_params, k_x = jax.random.split(key)
    raw_params = init_params(k_params, input_dim, inv_size, prc_size)
    packed = pack_params(raw_params, inv_size, prc_size)
    x = jax.random.normal(k_x, (batch, input_dim), jnp.float32)

    raw_inv, raw_prc = ppo_d_actor_forward(x, packed, inv_size, prc_size)
    jax.block_until_ready((raw_inv, raw_prc))

    # Sanity check against a pure-JAX reference (same bf16 quantization).
    ref_inv, ref_prc = _reference_forward(x, raw_params)
    assert raw_inv.shape == (batch, inv_size)
    assert raw_prc.shape == (batch, prc_size)
    assert jnp.allclose(raw_inv, ref_inv, atol=2e-2, rtol=2e-2)
    assert jnp.allclose(raw_prc, ref_prc, atol=2e-2, rtol=2e-2)

    print("KERNEL_OK")
</pallas_src>

<mosaic_0001>
module attributes {stable_mosaic.version = 11 : i64} {
  func.func @_actor_kernel(%arg0: i32, %arg1: memref<8x32xbf16, #tpu.memory_space<vmem>>, %arg2: memref<32x256xbf16, #tpu.memory_space<vmem>>, %arg3: memref<256x384xbf16, #tpu.memory_space<vmem>>, %arg4: memref<1x640xf32, #tpu.memory_space<vmem>>, %arg5: memref<8x128xf32, #tpu.memory_space<vmem>>) attributes {dimension_semantics = [#tpu.dimension_semantics<parallel>], iteration_bounds = array<i64: 1>, scalar_prefetch = 0 : i64, scratch_operands = 0 : i64, tpu.core_type = #tpu.core_type<tc>, window_params = [{transform_indices = @transform_0, window_bounds = array<i64: 8, 32>}, {pipeline_mode = #tpu.pipeline_mode<synchronous>, transform_indices = @transform_1, window_bounds = array<i64: 32, 256>}, {pipeline_mode = #tpu.pipeline_mode<synchronous>, transform_indices = @transform_2, window_bounds = array<i64: 256, 384>}, {pipeline_mode = #tpu.pipeline_mode<synchronous>, transform_indices = @transform_3, window_bounds = array<i64: 1, 640>}, {transform_indices = @transform_4, window_bounds = array<i64: 8, 128>}]} {
    %c0 = arith.constant 0 : index
    %c0_0 = arith.constant 0 : index
    %0 = vector.load %arg1[%c0, %c0_0] : memref<8x32xbf16, #tpu.memory_space<vmem>>, vector<8x32xbf16>
    %c0_1 = arith.constant 0 : index
    %c0_2 = arith.constant 0 : index
    %1 = vector.load %arg2[%c0_1, %c0_2] : memref<32x256xbf16, #tpu.memory_space<vmem>>, vector<32x256xbf16>
    %c0_3 = arith.constant 0 : index
    %c0_4 = arith.constant 0 : index
    %2 = vector.load %arg3[%c0_3, %c0_4] : memref<256x384xbf16, #tpu.memory_space<vmem>>, vector<256x256xbf16>
    %c0_5 = arith.constant 0 : index
    %c256 = arith.constant 256 : index
    %3 = vector.load %arg3[%c0_5, %c256] : memref<256x384xbf16, #tpu.memory_space<vmem>>, vector<256x128xbf16>
    %c0_6 = arith.constant 0 : index
    %c0_7 = arith.constant 0 : index
    %4 = vector.load %arg4[%c0_6, %c0_7] : memref<1x640xf32, #tpu.memory_space<vmem>>, vector<1x256xf32>
    %c0_8 = arith.constant 0 : index
    %c256_9 = arith.constant 256 : index
    %5 = vector.load %arg4[%c0_8, %c256_9] : memref<1x640xf32, #tpu.memory_space<vmem>>, vector<1x256xf32>
    %c0_10 = arith.constant 0 : index
    %c512 = arith.constant 512 : index
    %6 = vector.load %arg4[%c0_10, %c512] : memref<1x640xf32, #tpu.memory_space<vmem>>, vector<1x128xf32>
    %cst = arith.constant dense<0.000000e+00> : vector<8x256xf32>
    %7 = tpu.matmul %0, %1, %cst {dimension_numbers = #tpu.dot_dimension_numbers<[1], [0], [0], [1], [0, 0, 1, 1], [], []>} : vector<8x32xbf16>, vector<32x256xbf16>, vector<8x256xf32> -> vector<8x256xf32>
    %8 = vector.broadcast %4 : vector<1x256xf32> to vector<8x256xf32>
    %9 = arith.addf %7, %8 : vector<8x256xf32>
    %cst_11 = arith.constant 0.000000e+00 : f32
    %10 = vector.broadcast %cst_11 : f32 to vector<8x256xf32>
    %11 = arith.maximumf %9, %10 : vector<8x256xf32>
    %12 = arith.truncf %11 : vector<8x256xf32> to vector<8x256xbf16>
    %cst_12 = arith.constant dense<0.000000e+00> : vector<8x256xf32>
    %13 = tpu.matmul %12, %2, %cst_12 {dimension_numbers = #tpu.dot_dimension_numbers<[1], [0], [0], [1], [0, 0, 1, 1], [], []>} : vector<8x256xbf16>, vector<256x256xbf16>, vector<8x256xf32> -> vector<8x256xf32>
    %14 = vector.broadcast %5 : vector<1x256xf32> to vector<8x256xf32>
    %15 = arith.addf %13, %14 : vector<8x256xf32>
    %cst_13 = arith.constant 0.000000e+00 : f32
    %16 = vector.broadcast %cst_13 : f32 to vector<8x256xf32>
    %17 = arith.maximumf %15, %16 : vector<8x256xf32>
    %18 = arith.truncf %17 : vector<8x256xf32> to vector<8x256xbf16>
    %cst_14 = arith.constant dense<0.000000e+00> : vector<8x128xf32>
    %19 = tpu.matmul %18, %3, %cst_14 {dimension_numbers = #tpu.dot_dimension_numbers<[1], [0], [0], [1], [0, 0, 1, 1], [], []>} : vector<8x256xbf16>, vector<256x128xbf16>, vector<8x128xf32> -> vector<8x128xf32>
    %20 = vector.broadcast %6 : vector<1x128xf32> to vector<8x128xf32>
    %21 = arith.addf %19, %20 : vector<8x128xf32>
    %c0_15 = arith.constant 0 : index
    %c0_16 = arith.constant 0 : index
    %22 = vector.load %arg5[%c0_15, %c0_16] : memref<8x128xf32, #tpu.memory_space<vmem>>, vector<8x128xf32>
    tpu.vector_store %arg5[%c0_15, %c0_16], %21 {strides = array<i32>} : memref<8x128xf32, #tpu.memory_space<vmem>>, vector<8x128xf32>,
    return
  }
  func.func @transform_0(%arg0: i32) -> (i32, i32) {
    %c0_i32 = arith.constant 0 : i32
    %c0_i32_0 = arith.constant 0 : i32
    return %arg0, %c0_i32 : i32, i32
  }
  func.func @transform_1(%arg0: i32) -> (i32, i32) {
    %c0_i32 = arith.constant 0 : i32
    %c0_i32_0 = arith.constant 0 : i32
    %c0_i32_1 = arith.constant 0 : i32
    return %c0_i32, %c0_i32_0 : i32, i32
  }
  func.func @transform_2(%arg0: i32) -> (i32, i32) {
    %c0_i32 = arith.constant 0 : i32
    %c0_i32_0 = arith.constant 0 : i32
    %c0_i32_1 = arith.constant 0 : i32
    return %c0_i32, %c0_i32_0 : i32, i32
  }
  func.func @transform_3(%arg0: i32) -> (i32, i32) {
    %c0_i32 = arith.constant 0 : i32
    %c0_i32_0 = arith.constant 0 : i32
    %c0_i32_1 = arith.constant 0 : i32
    return %c0_i32, %c0_i32_0 : i32, i32
  }
  func.func @transform_4(%arg0: i32) -> (i32, i32) {
    %c0_i32 = arith.constant 0 : i32
    %c0_i32_0 = arith.constant 0 : i32
    return %arg0, %c0_i32 : i32, i32
  }
}

</mosaic_0001>

<bundles_post_ra>
// kernel: tpu_custom_call.1
= control target key start
LH: loop header
LB: loop body
LE: loop exit
PB: predicated region body
PF: predicated region fallthrough
CT: control target
= control target key end

     0   :  { %9 = vsyncpa [#allocation3], 0  ;;  %s881_s0 = inlined_call_operand.hbm [shape: bf16[8,32], index: 0, kind: input, shape index: {}]   ;;  %s882_s1 = inlined_call_operand.hbm [shape: bf16[32,256], index: 1, kind: input, shape index: {}]   ;;  %s883_s2 = inlined_call_operand.hbm [shape: bf16[256,384], index: 2, kind: input, shape index: {}]   ;;  %s884_s3 = inlined_call_operand.vmem [shape: f32[1,640], index: 3, kind: input, shape index: {}]   ;;  %s885_s4 = inlined_call_operand.hbm [shape: f32[8,128], index: 4, kind: output, shape index: {}]  }
   0x1   :  { %10 = vsyncpa [#allocation6], 0 }
   0x2   :  { %11 = vsyncpa [#allocation4], 0  ;;  %s826_s15 = smov [#allocation5]  }
   0x3   :  { %s27_s16 = sshll.u32 %s826_s15, 4  ;;  %s28_s16 = int_to_ptr.vmem [resolvable:$true] %s27_s16 }
   0x4   :  { %s748_s17 = scalar_lea.vmem %s28_s16, 512  ;;  %p753_p1 = scmp.lt.s32.totalorder %s28_s16, %s28_s16 }
   0x5   :  { %p749_p0 = scmp.ne.s32.totalorder %s28_s16, %s748_s17  ;;  %p754_p2 = scmp.lt.s32.totalorder %s748_s17, %s748_s17 }
   0x7   :  { %p755_p3 = por %p754_p2, %p753_p1 }
   0x9   :  { %p756_p4 = pnand %p755_p3, %p749_p0 }
   0xb   :  { %759 = shalt.err (!%p756_p4)
}
   0xc   :  { %s827_s18 = smov 128   ;;  %s828_s19 = smov 8  }
   0xd   :  { %33 = dma.hbm_to_vmem [thread:$0]  %s882_s1, 512, %s28_s16, [#allocation6], %s827_s18, %s827_s18, %s828_s19  }
   0xe   :  { %s829_s22 = smov [#allocation2]   ;;  %s830_s24 = smov [#allocation7]  }
   0xf   :  { %s18_s23 = sshll.u32 %s829_s22, 4  ;;  %s39_s25 = sshll.u32 %s830_s24, 4  ;;  %s19_s23 = int_to_ptr.vmem [resolvable:$true] %s18_s23  ;;  %s40_s25 = int_to_ptr.vmem [resolvable:$true] %s39_s25 }
  0x10   :  { %s768_s26 = scalar_lea.vmem %s19_s23, 64  ;;  %p773_p6 = scmp.lt.s32.totalorder %s19_s23, %s19_s23 }
  0x11   :  { %p769_p5 = scmp.ne.s32.totalorder %s19_s23, %s768_s26  ;;  %p774_p7 = scmp.lt.s32.totalorder %s768_s26, %s768_s26 }
  0x13   :  { %p775_p8 = por %p774_p7, %p773_p6 }
  0x15   :  { %p776_p9 = pnand %p775_p8, %p769_p5 }
  0x17   :  { %779 = shalt.err (!%p776_p9)
}
  0x18   :  { %21 = dma.hbm_to_vmem [thread:$0]  %s881_s0, 64, %s19_s23, [#allocation3]  }
  0x19   :  { %s788_s29 = scalar_lea.vmem %s40_s25, 6144  ;;  %p793_p11 = scmp.lt.s32.totalorder %s40_s25, %s40_s25 }
  0x1a   :  { %p789_p10 = scmp.ne.s32.totalorder %s40_s25, %s788_s29  ;;  %p794_p12 = scmp.lt.s32.totalorder %s788_s29, %s788_s29 }
  0x1c   :  { %p795_p13 = por %p794_p12, %p793_p11 }
  0x1e   :  { %p796_p0 = pnand %p795_p13, %p789_p10 }
  0x20   :  { %799 = shalt.err (!%p796_p0)
}
  0x21   :  { %s831_s1 = smov 192   ;;  %s832_s30 = smov 12  }
  0x22   :  { %45 = dma.hbm_to_vmem [thread:$0]  %s883_s2, 6144, %s40_s25, [#allocation6], %s831_s1, %s831_s1, %s832_s30  }
  0x23   :  { %820 = dma.done.wait [#allocation3], 64  }
  0x24   :  { %821 = vsyncadd [#allocation3], 4294967232 }
  0x25   :  { %822 = dma.done.wait [#allocation6], 6656  }
  0x26   :  { %823 = vsyncadd [#allocation6], 4294960640  ;;  %v833_v0 = vmov 0   ;;  %v670_v1 = vld [vmem:[#allocation5 + $0x14] ss:$8 sps:$4 sm:$0xff]   ;;  %vm161_vm0 = vcmask 261120   ;;  %v131_v50 = vlaneseq }
  0x27   :  { %197 = vmatprep.mubr.bf16.mxu0 %v833_v0  ;;  %v672_v2 = vld [vmem:[#allocation5 + $0x10] ss:$8 sps:$4 sm:$0xff]   ;;  %177 = vmatprep.subr.bf16.mxu0 %v670_v1  ;;  %v673_v3 = vld [vmem:[#allocation5 + $0x4] ss:$8 sps:$4 sm:$0xff]   ;;  %v675_v4 = vld [vmem:[#allocation5] ss:$8 sps:$4 sm:$0xff]  }
  0x28   :  { %178 = vmatpush1.bf16.msra.mxu0 %v672_v2  ;;  %v676_v5 = vld [vmem:[#allocation7 + $0xac] ss:$12 sps:$4 sm:$0xff]   ;;  %v678_v6 = vld [vmem:[#allocation7 + $0xa8] ss:$12 sps:$4 sm:$0xff]   ;;  %v58_v8 = vld [vmem:[#allocation2] sm:$0xf] }
  0x29   :  { %179 = vmatprep.subr.bf16.mxu0 %v673_v3  ;;  %381 = vmatprep.subr.bf16.mxu1 %v676_v5  ;;  %v679_v7 = vld [vmem:[#allocation7 + $0x94] ss:$12 sps:$4 sm:$0xff]   ;;  %v681_v9 = vld [vmem:[#allocation7 + $0x90] ss:$12 sps:$4 sm:$0xff]   ;;  %v684_v11 = vld [vmem:[#allocation7 + $0x78] ss:$12 sps:$4 sm:$0xff]  }
  0x2a   :  { %382 = vmatpush1.bf16.msra.mxu1 %v678_v6  ;;  %v682_v10 = vld [vmem:[#allocation7 + $0x7c] ss:$12 sps:$4 sm:$0xff]   ;;  %v685_v12 = vld [vmem:[#allocation7 + $0x64] ss:$12 sps:$4 sm:$0xff]   ;;  %v687_v13 = vld [vmem:[#allocation7 + $0x60] ss:$12 sps:$4 sm:$0xff]  }
  0x2b   :  { %383 = vmatprep.subr.bf16.mxu1 %v679_v7  ;;  %v688_v14 = vld [vmem:[#allocation7 + $0x4c] ss:$12 sps:$4 sm:$0xff]   ;;  %v690_v15 = vld [vmem:[#allocation7 + $0x48] ss:$12 sps:$4 sm:$0xff]   ;;  %v693_v17 = vld [vmem:[#allocation7 + $0x30] ss:$12 sps:$4 sm:$0xff]  }
  0x2c   :  { %180 = vmatpush1.bf16.msra.mxu0 %v675_v4  ;;  %v691_v16 = vld [vmem:[#allocation7 + $0x34] ss:$12 sps:$4 sm:$0xff]   ;;  %v694_v18 = vld [vmem:[#allocation7 + $0x1c] ss:$12 sps:$4 sm:$0xff]   ;;  %v696_v19 = vld [vmem:[#allocation7 + $0x18] ss:$12 sps:$4 sm:$0xff]  }
  0x2d   :  { %v697_v20 = vld [vmem:[#allocation7 + $0x4] ss:$12 sps:$4 sm:$0xff]   ;;  %v699_v21 = vld [vmem:[#allocation7] ss:$12 sps:$4 sm:$0xff]   ;;  %v702_v23 = vld [vmem:[#allocation7 + $0x168] ss:$12 sps:$4 sm:$0xff]  }
  0x2e   :  { %384 = vmatpush1.bf16.msra.mxu1 %v681_v9  ;;  %v700_v22 = vld [vmem:[#allocation7 + $0x16c] ss:$12 sps:$4 sm:$0xff]   ;;  %v703_v24 = vld [vmem:[#allocation7 + $0x154] ss:$12 sps:$4 sm:$0xff]   ;;  %v705_v25 = vld [vmem:[#allocation7 + $0x150] ss:$12 sps:$4 sm:$0xff]  }
  0x2f   :  { %589 = vmatmul.mubr.msk.bf16.vlgmr.msra.gmra.mxu0 %vm161_vm0, %v58_v8  ;;  %385 = vmatprep.subr.bf16.mxu1 %v682_v10  ;;  %v706_v26 = vld [vmem:[#allocation7 + $0x13c] ss:$12 sps:$4 sm:$0xff]   ;;  %v708_v27 = vld [vmem:[#allocation7 + $0x138] ss:$12 sps:$4 sm:$0xff]   ;;  %v711_v29 = vld [vmem:[#allocation7 + $0x120] ss:$12 sps:$4 sm:$0xff]  }
  0x30   :  { %v709_v28 = vld [vmem:[#allocation7 + $0x124] ss:$12 sps:$4 sm:$0xff]   ;;  %v712_v30 = vld [vmem:[#allocation7 + $0x10c] ss:$12 sps:$4 sm:$0xff]   ;;  %v714_v31 = vld [vmem:[#allocation7 + $0x108] ss:$12 sps:$4 sm:$0xff]  }
  0x31   :  { %v715_v32 = vld [vmem:[#allocation7 + $0xf4] ss:$12 sps:$4 sm:$0xff]   ;;  %v717_v33 = vld [vmem:[#allocation7 + $0xf0] ss:$12 sps:$4 sm:$0xff]   ;;  %v720_v35 = vld [vmem:[#allocation7 + $0xd8] ss:$12 sps:$4 sm:$0xff]  }
  0x32   :  { %386 = vmatpush1.bf16.msra.mxu1 %v684_v11  ;;  %v718_v34 = vld [vmem:[#allocation7 + $0xdc] ss:$12 sps:$4 sm:$0xff]   ;;  %v721_v36 = vld [vmem:[#allocation7 + $0xc4] ss:$12 sps:$4 sm:$0xff]   ;;  %v723_v37 = vld [vmem:[#allocation7 + $0xc0] ss:$12 sps:$4 sm:$0xff]  }
  0x33   :  { %387 = vmatprep.subr.bf16.mxu1 %v685_v12  ;;  %v724_v38 = vld [vmem:[#allocation7 + $0x170] ss:$12 sps:$4 sm:$0xff]   ;;  %v726_v40 = vld [vmem:[#allocation7 + $0x158] ss:$12 sps:$4 sm:$0xff]   ;;  %v728_v42 = vld [vmem:[#allocation7 + $0x140] ss:$12 sps:$4 sm:$0xff]  }
  0x34   :  { %v725_v39 = vld [vmem:[#allocation7 + $0xb0] ss:$12 sps:$4 sm:$0xff]   ;;  %639 = vmatprep.subr.bf16.mxu0 %v724_v38  ;;  %v727_v41 = vld [vmem:[#allocation7 + $0x98] ss:$12 sps:$4 sm:$0xff]   ;;  %v729_v43 = vld [vmem:[#allocation7 + $0x80] ss:$12 sps:$4 sm:$0xff]  }
  0x35   :  { %640 = vmatpush3.bf16.msra.mxu0 %v725_v39  ;;  %v730_v44 = vld [vmem:[#allocation7 + $0x128] ss:$12 sps:$4 sm:$0xff]   ;;  %v732_v46 = vld [vmem:[#allocation7 + $0x110] ss:$12 sps:$4 sm:$0xff]   ;;  %v734_v48 = vld [vmem:[#allocation7 + $0xf8] ss:$12 sps:$4 sm:$0xff]  }
  0x36   :  { %388 = vmatpush1.bf16.msra.mxu1 %v687_v13  ;;  %641 = vmatprep.subr.bf16.mxu0 %v726_v40  ;;  %v731_v45 = vld [vmem:[#allocation7 + $0x68] ss:$12 sps:$4 sm:$0xff]   ;;  %v733_v47 = vld [vmem:[#allocation7 + $0x50] ss:$12 sps:$4 sm:$0xff]   ;;  %v735_v49 = vld [vmem:[#allocation7 + $0x38] ss:$12 sps:$4 sm:$0xff]  }
  0x37   :  { %389 = vmatprep.subr.bf16.mxu1 %v688_v14  ;;  %v132_v51 = vshrl.u32 %v131_v50, 7  ;;  %v127_v53 = vld [vmem:[%s884_s3] sm:$0x3]  ;;  %v736_v3 = vld [vmem:[#allocation7 + $0xe0] ss:$12 sps:$4 sm:$0xff]   ;;  %s834_s11 = smov [#allocation8]  }
  0x38   :  { %v737_v4 = vld [vmem:[#allocation7 + $0x20] ss:$12 sps:$4 sm:$0xff]   ;;  %v738_v5 = vld [vmem:[#allocation7 + $0xc8] ss:$12 sps:$4 sm:$0xff]   ;;  %v128_v7 = vld [vmem:[%s884_s3 + $0x2] sm:$0x3] }
  0x39   :  { %642 = vmatpush3.bf16.msra.mxu0 %v727_v41  ;;  %v133_v52 = vsub.s32 0, %v132_v51  ;;  %v137_v54 = vsub.s32 1, %v132_v51  ;;  %v739_v6 = vld [vmem:[#allocation7 + $0x8] ss:$12 sps:$4 sm:$0xff]   ;;  %s575_s12 = sshll.u32 %s834_s11, 4  ;;  %s576_s12 = int_to_ptr.vmem [resolvable:$true] %s575_s12 }
  0x3a   :  { %390 = vmatpush1.bf16.msra.mxu1 %v690_v15  ;;  %643 = vmatprep.subr.bf16.mxu0 %v728_v42  ;;  %s800_s13 = scalar_lea.vmem %s576_s12, 128  ;;  %p805_p2 = scmp.lt.s32.totalorder %s576_s12, %s576_s12 }
  0x3b   :  { %391 = vmatprep.subr.bf16.mxu1 %v691_v16  ;;  %v134_v55 = vrot.slane %v127_v53, %v133_v52  ;;  %v138_v56 = vrot.slane %v127_v53, %v137_v54  ;;  %v214_v8 = vrot.slane %v128_v7, %v133_v52  ;;  %v218_v9 = vrot.slane %v128_v7, %v137_v54  ;;  %p801_p1 = scmp.ne.s32.totalorder %s576_s12, %s800_s13  ;;  %p806_p3 = scmp.lt.s32.totalorder %s800_s13, %s800_s13 }
  0x3d   :  { %644 = vmatpush3.bf16.msra.mxu0 %v729_v43  ;;  %p807_p4 = por %p806_p3, %p805_p2 }
  0x3e   :  { %392 = vmatpush1.bf16.msra.mxu1 %v693_v17  ;;  %645 = vmatprep.subr.bf16.mxu0 %v730_v44 }
  0x3f   :  { %393 = vmatprep.subr.bf16.mxu1 %v694_v18  ;;  %p808_p5 = pnand %p807_p4, %p801_p1 }
  0x41   :  { %646 = vmatpush3.bf16.msra.mxu0 %v731_v45 }
  0x42   :  { %394 = vmatpush1.bf16.msra.mxu1 %v696_v19  ;;  %647 = vmatprep.subr.bf16.mxu0 %v732_v46 }
  0x43   :  { %395 = vmatprep.subr.bf16.mxu1 %v697_v20 }
  0x45   :  { %648 = vmatpush3.bf16.msra.mxu0 %v733_v47 }
  0x46   :  { %396 = vmatpush1.bf16.msra.mxu1 %v699_v21  ;;  %649 = vmatprep.subr.bf16.mxu0 %v734_v48  ;;  %v622_v21 = vld [vmem:[%s884_s3 + $0x4] ss:$0 sm:$0xff] }
  0x47   :  { %397 = vmatprep.subr.bf16.mxu1 %v700_v22 }
  0x49   :  { %650 = vmatpush3.bf16.msra.mxu0 %v735_v49 }
  0x4a   :  { %398 = vmatpush2.bf16.msra.mxu1 %v702_v23  ;;  %651 = vmatprep.subr.bf16.mxu0 %v736_v3 }
  0x4b   :  { %399 = vmatprep.subr.bf16.mxu1 %v703_v24 }
  0x4d   :  { %652 = vmatpush3.bf16.msra.mxu0 %v737_v4 }
  0x4e   :  { %400 = vmatpush2.bf16.msra.mxu1 %v705_v25  ;;  %653 = vmatprep.subr.bf16.mxu0 %v738_v5 }
  0x4f   :  { %401 = vmatprep.subr.bf16.mxu1 %v706_v26 }
  0x51   :  { %654 = vmatpush3.bf16.msra.mxu0 %v739_v6 }
  0x52   :  { %402 = vmatpush2.bf16.msra.mxu1 %v708_v27 }
  0x53   :  { %403 = vmatprep.subr.bf16.mxu1 %v709_v28 }
  0x56   :  { %404 = vmatpush2.bf16.msra.mxu1 %v711_v29 }
  0x57   :  { %405 = vmatprep.subr.bf16.mxu1 %v712_v30 }
  0x5a   :  { %406 = vmatpush2.bf16.msra.mxu1 %v714_v31 }
  0x5b   :  { %407 = vmatprep.subr.bf16.mxu1 %v715_v32 }
  0x5e   :  { %408 = vmatpush2.bf16.msra.mxu1 %v717_v33 }
  0x5f   :  { %409 = vmatprep.subr.bf16.mxu1 %v718_v34 }
  0x62   :  { %410 = vmatpush2.bf16.msra.mxu1 %v720_v35 }
  0x63   :  { %411 = vmatprep.subr.bf16.mxu1 %v721_v36 }
  0x66   :  { %412 = vmatpush2.bf16.msra.mxu1 %v723_v37 }
  0xef   :  { %v199_v57 = vpop.f32.mrf.mxu0 }
  0xf0   :  { %v200_v58 = vadd.f32 %v199_v57, %v134_v55 }
  0xf1   :  { %v201_v59 = vpop.f32.mrf.mxu0 }
  0xf2   :  { %v202_v60 = vadd.f32 %v201_v59, %v138_v56  ;;  %v206_v61 = vmax.f32 %v200_v58, 0.0 }
  0xf3   :  { %v203_v62 = vpop.f32.mrf.mxu0 }
  0xf4   :  { %v207_v63 = vmax.f32 %v202_v60, 0.0  ;;  %v208_v2 = vpack.c.bf16 %v206_v61, %v206_v61 }
  0xf5   :  { %v204_v0 = vpop.f32.mrf.mxu0 }
  0xf6   :  { %v209_v1 = vpack.c.bf16 %v207_v63, %v207_v63 }
  0xf8   :  { %413 = vmatprep.mubr.bf16.mxu1 %v209_v1 }
  0xf9   :  { %414 = vmatmul.mubr.bf16.vlgmr.msra.gmra.mxu1 %v208_v2 }
 0x1b9   :  { %v415_v10 = vpop.f32.mrf.mxu1 }
 0x1ba   :  { %v416_v11 = vadd.f32 %v415_v10, %v214_v8 }
 0x1bb   :  { %v417_v12 = vpop.f32.mrf.mxu1 }
 0x1bc   :  { %v418_v13 = vadd.f32 %v417_v12, %v218_v9  ;;  %v422_v14 = vmax.f32 %v416_v11, 0.0 }
 0x1bd   :  { %v419_v15 = vpop.f32.mrf.mxu1 }
 0x1be   :  { %v423_v16 = vmax.f32 %v418_v13, 0.0  ;;  %v424_v19 = vpack.c.bf16 %v422_v14, %v422_v14 }
 0x1bf   :  { %v420_v17 = vpop.f32.mrf.mxu1 }
 0x1c0   :  { %v425_v18 = vpack.c.bf16 %v423_v16, %v423_v16 }
 0x1c2   :  { %560 = vmatprep.mubr.bf16.mxu0 %v425_v18 }
 0x1c3   :  { %561 = vmatmul.mubr.bf16.vlgmr.msra.gmra.mxu0 %v424_v19 }
 0x283   :  { %v655_v20 = vpop.f32.mrf.mxu0 }
 0x285   :  { %v656_v22 = vpop.f32.mrf.mxu0 }
 0x286   :  { %v657_v23 = vadd.f32 %v656_v22, %v655_v20 }
 0x287   :  { %v658_v24 = vpop.f32.mrf.mxu0 }
 0x288   :  { %v563_v25 = vadd.f32 %v657_v23, %v622_v21 }
 0x289   :  { %v659_v26 = vpop.f32.mrf.mxu0 }
 0x28a   :  { %568 = vst [vmem:[#allocation8] sm:$0xff] %v563_v25 }
 0x28b   :  { %811 = shalt.err (!%p808_p5)
}
 0x28c   :  { %578 = dma.vmem_to_hbm [thread:$0]  %s576_s12, 128, %s885_s4, [#allocation4]  }
 0x28d   :  { %824 = dma.done.wait [#allocation4], 128  }
 0x28e   :  { %825 = vsyncadd [#allocation4], 4294967168 }
 0x28f   :  { %582 = vsyncpa [#allocation3], 1 }
 0x290   :  { %583 = vsyncpa [#allocation6], 1 }
 0x291   :  { %584 = vsyncpa [#allocation4], 1 }

</bundles_post_ra>
